<compile_context>
chip_gen: v6e
topology: v6e:2x2x1
jax: 0.10.0
libtpu: 0.0.40
codegen_flags: <defaults>
</compile_context>

<pallas_src>
import functools

import jax
import jax.numpy as jnp
from jax.experimental import pallas as pl
from jax.experimental.pallas import tpu as pltpu

ALPHA = 1.0
GAMMA = 3  # small integer power -> plain VPU multiplies


def _focal_loss_kernel(x_ref, t_ref, o_ref, *, n_total, tile_n):
    i = pl.program_id(0)

    x = x_ref[...].astype(jnp.float32)   # (TN, C); upcast only after the load
    t_col = t_ref[...]                    # (TN, 1) int32 column (no relayout)

    # cross_entropy(reduction='none') per row: logsumexp(x) - x[target]
    m = jnp.max(x, axis=-1, keepdims=True)                            # (TN, 1)
    lse = m + jnp.log(jnp.sum(jnp.exp(x - m), axis=-1, keepdims=True))

    # One-hot gather of the target logit via a lane-index compare.
    # The iota is grid-invariant; a scratch init under pl.when(i == 0) would be
    # unsafe with megacore "parallel" (only one core would run it), so it stays
    # inline and Mosaic's loop-invariant hoisting handles it.
    col = jax.lax.broadcasted_iota(jnp.int32, x.shape, 1)              # (TN, C)
    tgt_logit = jnp.sum(jnp.where(col == t_col, x, 0.0),
                        axis=-1, keepdims=True)                        # (TN, 1)

    ce = lse - tgt_logit                                               # (TN, 1)
    pt = jnp.exp(-ce)
    focal = ALPHA * (1.0 - pt) ** GAMMA * ce                           # (TN, 1)

    # Zero rows past N (implicitly padded last block). jnp.where is a select,
    # so garbage/NaN in out-of-range rows cannot propagate into the sum.
    row = i * tile_n + jax.lax.broadcasted_iota(jnp.int32, focal.shape, 0)
    focal = jnp.where(row < n_total, focal, 0.0)

    # One partial sum per tile, written lane-aligned: lane 0 of this tile's
    # private (1, 128) output block, all other lanes exactly 0.
    part = jnp.sum(focal)
    lane = jax.lax.broadcasted_iota(jnp.int32, (1, 128), 1)
    o_ref[...] = jnp.where(lane == 0, part, 0.0).astype(jnp.float32)


def _round_up(x, m):
    return ((x + m - 1) // m) * m


def _cdiv(a, b):
    return -(-a // b)


def _vmem_budget_bytes():
    # Conservative total (double-buffered) working-set budget that fits every
    # generation's scoped-VMEM default (16 MiB v5e, 32 MiB v6e/v7x); bump a
    # little where the chip reports more VMEM.
    budget = 8 << 20
    try:
        cap = pltpu.get_tpu_info().vmem_capacity_bytes
        budget = min(max(budget, cap // 8), 12 << 20)
    except Exception:
        pass  # keep the safe default
    return budget


def _choose_tile_rows(n, c, budget_bytes):
    """Balanced, VMEM-aware row tile. Returns (tile_n, num_tiles)."""
    # Per-row VMEM cost of one double-buffered grid step:
    #   logits  : 2 * c   * 4 B  (f32 upper bound)
    #   targets : 2 * 128 * 4 B  ((tile_n, 1) int32 pads its lane dim to 128)
    per_row = 2 * (c + 128) * 4
    cap = max(8, (budget_bytes // per_row) // 8 * 8)
    cap = min(cap, 8192)
    # Give the v7x megacore >= 2 grid steps to shard whenever N allows it.
    cap = min(cap, max(8, _round_up(_cdiv(n, 2), 8)))
    num_tiles = _cdiv(n, cap)
    tile_n = _round_up(_cdiv(n, num_tiles), 8)   # balanced tiles, 8-aligned
    num_tiles = _cdiv(n, tile_n)
    return tile_n, num_tiles


def focal_loss(inputs, targets):
    """inputs: (N, C) float logits; targets: (N,) integer class indices in [0, C)."""
    N, C = inputs.shape
    if N == 0:  # torch: mean over an empty tensor is NaN
        return jnp.float32(jnp.nan)

    tile_n, num_tiles = _choose_tile_rows(N, C, _vmem_budget_bytes())

    t_col = targets.astype(jnp.int32).reshape(N, 1)   # tiny; no logits pad/copy
    itemsize = jnp.dtype(inputs.dtype).itemsize

    kernel = functools.partial(_focal_loss_kernel, n_total=N, tile_n=tile_n)

    partials = pl.pallas_call(
        kernel,
        out_shape=jax.ShapeDtypeStruct((1, num_tiles * 128), jnp.float32),
        grid_spec=pltpu.PrefetchScalarGridSpec(
            num_scalar_prefetch=0,
            grid=(num_tiles,),
            in_specs=[
                pl.BlockSpec((tile_n, C), lambda i: (i, 0)),  # logits rows
                pl.BlockSpec((tile_n, 1), lambda i: (i, 0)),  # target column
            ],
            # per-tile private 128-lane slab -> unmasked stores, megacore-safe
            out_specs=pl.BlockSpec((1, 128), lambda i: (0, i)),
        ),
        compiler_params=pltpu.CompilerParams(
            dimension_semantics=("parallel",),
        ),
        cost_estimate=pl.CostEstimate(
            flops=6 * N * C,
            transcendentals=N * C,
            bytes_accessed=N * C * itemsize + N * 4 + num_tiles * 128 * 4,
        ),
    )(inputs, t_col)

    # reduction='mean': non-lane-0 entries are exactly 0, so a plain sum of the
    # tiny (1, num_tiles*128) slab is exactly the sum of per-tile partials.
    return jnp.sum(partials) / jnp.float32(N)


def _reference_focal_loss(inputs, targets):
    # pure-JAX reference (same math as the PyTorch module), computed in f32
    x = inputs.astype(jnp.float32)
    logz = jax.scipy.special.logsumexp(x, axis=-1)
    tgt = jnp.take_along_axis(x, targets[:, None].astype(jnp.int32), axis=-1)[:, 0]
    ce = logz - tgt
    pt = jnp.exp(-ce)
    focal = ALPHA * (1.0 - pt) ** GAMMA * ce
    return jnp.mean(focal)


if __name__ == "__main__":
    key = jax.random.PRNGKey(0)
    k1, k2, k3, k4 = jax.random.split(key, 4)

    # Case 1: f32 logits, lane-dense class count (also exercises num_tiles > 1).
    N1, C1 = 16, 128
    x1 = jax.random.normal(k1, (N1, C1), dtype=jnp.float32)
    t1 = jax.random.randint(k2, (N1,), 0, C1, dtype=jnp.int32)
    loss1 = focal_loss(x1, t1)
    jax.block_until_ready(loss1)
    ref1 = _reference_focal_loss(x1, t1)
    assert jnp.allclose(loss1, ref1, rtol=1e-5, atol=1e-6), (loss1, ref1)

    # Case 2: bf16 logits, ragged N (exercises implicit last-block padding and
    # the lane-aligned multi-tile partial-sum path).
    N2, C2 = 13, 64
    x2 = jax.random.normal(k3, (N2, C2), dtype=jnp.bfloat16)
    t2 = jax.random.randint(k4, (N2,), 0, C2, dtype=jnp.int32)
    loss2 = focal_loss(x2, t2)
    jax.block_until_ready(loss2)
    ref2 = _reference_focal_loss(x2, t2)
    assert jnp.allclose(loss2, ref2, rtol=2e-5, atol=1e-5), (loss2, ref2)

    print("KERNEL_OK")
</pallas_src>

<mosaic_0001>
module attributes {stable_mosaic.version = 11 : i64} {
  func.func @_focal_loss_kernel(%arg0: i32, %arg1: memref<8x128xf32, #tpu.memory_space<vmem>>, %arg2: memref<8x1xi32, #tpu.memory_space<vmem>>, %arg3: memref<1x128xf32, #tpu.memory_space<vmem>>) attributes {dimension_semantics = [#tpu.dimension_semantics<parallel>], iteration_bounds = array<i64: 2>, scalar_prefetch = 0 : i64, scratch_operands = 0 : i64, tpu.core_type = #tpu.core_type<tc>, window_params = [{transform_indices = @transform_0, window_bounds = array<i64: 8, 128>}, {transform_indices = @transform_1, window_bounds = array<i64: 8, 1>}, {transform_indices = @transform_2, window_bounds = array<i64: 1, 128>}]} {
    %c0 = arith.constant 0 : index
    %c0_0 = arith.constant 0 : index
    %0 = vector.load %arg1[%c0, %c0_0] : memref<8x128xf32, #tpu.memory_space<vmem>>, vector<8x128xf32>
    %c0_1 = arith.constant 0 : index
    %c0_2 = arith.constant 0 : index
    %1 = vector.load %arg2[%c0_1, %c0_2] : memref<8x1xi32, #tpu.memory_space<vmem>>, vector<8x1xi32>
    %cst = arith.constant dense<0xFF800000> : vector<8xf32>
    %2 = vector.multi_reduction <maximumf>, %0, %cst [1] : vector<8x128xf32> to vector<8xf32>
    %3 = vector.shape_cast %2 : vector<8xf32> to vector<8x1xf32>
    %4 = vector.broadcast %3 : vector<8x1xf32> to vector<8x128xf32>
    %5 = arith.subf %0, %4 : vector<8x128xf32>
    %6 = math.exp %5 : vector<8x128xf32>
    %cst_3 = arith.constant dense<0.000000e+00> : vector<8xf32>
    %7 = vector.multi_reduction <add>, %6, %cst_3 [1] : vector<8x128xf32> to vector<8xf32>
    %8 = vector.shape_cast %7 : vector<8xf32> to vector<8x1xf32>
    %9 = math.log %8 : vector<8x1xf32>
    %10 = arith.addf %3, %9 : vector<8x1xf32>
    %11 = tpu.iota {dimensions = array<i32: 1>} : vector<8x128xi32>
    %12 = vector.broadcast %1 : vector<8x1xi32> to vector<8x128xi32>
    %13 = arith.cmpi eq, %11, %12 : vector<8x128xi32>
    %cst_4 = arith.constant 0.000000e+00 : f32
    %14 = vector.broadcast %cst_4 : f32 to vector<8x128xf32>
    %15 = arith.select %13, %0, %14 : vector<8x128xi1>, vector<8x128xf32>
    %cst_5 = arith.constant dense<0.000000e+00> : vector<8xf32>
    %16 = vector.multi_reduction <add>, %15, %cst_5 [1] : vector<8x128xf32> to vector<8xf32>
    %17 = vector.shape_cast %16 : vector<8xf32> to vector<8x1xf32>
    %18 = arith.subf %10, %17 : vector<8x1xf32>
    %cst_6 = arith.constant 0.000000e+00 : f32
    %19 = vector.broadcast %cst_6 : f32 to vector<8x1xf32>
    %20 = arith.subf %19, %18 : vector<8x1xf32>
    %21 = math.exp %20 : vector<8x1xf32>
    %cst_7 = arith.constant 1.000000e+00 : f32
    %22 = vector.broadcast %cst_7 : f32 to vector<8x1xf32>
    %23 = arith.subf %22, %21 : vector<8x1xf32>
    %24 = arith.mulf %23, %23 : vector<8x1xf32>
    %25 = arith.mulf %23, %24 : vector<8x1xf32>
    %cst_8 = arith.constant 1.000000e+00 : f32
    %26 = vector.broadcast %cst_8 : f32 to vector<8x1xf32>
    %27 = arith.mulf %26, %25 : vector<8x1xf32>
    %28 = arith.mulf %27, %18 : vector<8x1xf32>
    %c8_i32 = arith.constant 8 : i32
    %29 = arith.muli %arg0, %c8_i32 : i32
    %30 = tpu.iota {dimensions = array<i32: 0>} : vector<8x1xi32>
    %31 = vector.broadcast %29 : i32 to vector<8x1xi32>
    %32 = arith.addi %31, %30 : vector<8x1xi32>
    %c16_i32 = arith.constant 16 : i32
    %33 = vector.broadcast %c16_i32 : i32 to vector<8x1xi32>
    %34 = arith.cmpi slt, %32, %33 : vector<8x1xi32>
    %cst_9 = arith.constant 0.000000e+00 : f32
    %35 = vector.broadcast %cst_9 : f32 to vector<8x1xf32>
    %36 = arith.select %34, %28, %35 : vector<8x1xi1>, vector<8x1xf32>
    %37 = vector.shape_cast %36 : vector<8x1xf32> to vector<1x8x1xf32>
    %cst_10 = arith.constant dense<0.000000e+00> : vector<1xf32>
    %38 = vector.multi_reduction <add>, %37, %cst_10 [1, 2] : vector<1x8x1xf32> to vector<1xf32>
    %39 = vector.shape_cast %38 : vector<1xf32> to vector<1x1x1xf32>
    %40 = vector.extract %39[0, 0, 0] : f32 from vector<1x1x1xf32>
    %41 = tpu.iota {dimensions = array<i32: 1>} : vector<1x128xi32>
    %c0_i32 = arith.constant 0 : i32
    %42 = vector.broadcast %c0_i32 : i32 to vector<1x128xi32>
    %43 = arith.cmpi eq, %41, %42 : vector<1x128xi32>
    %cst_11 = arith.constant 0.000000e+00 : f32
    %44 = vector.broadcast %40 : f32 to vector<1x128xf32>
    %45 = vector.broadcast %cst_11 : f32 to vector<1x128xf32>
    %46 = arith.select %43, %44, %45 : vector<1x128xi1>, vector<1x128xf32>
    %c0_12 = arith.constant 0 : index
    %c0_13 = arith.constant 0 : index
    %47 = vector.load %arg3[%c0_12, %c0_13] : memref<1x128xf32, #tpu.memory_space<vmem>>, vector<1x128xf32>
    tpu.vector_store %arg3[%c0_12, %c0_13], %46 {strides = array<i32>} : memref<1x128xf32, #tpu.memory_space<vmem>>, vector<1x128xf32>,
    return
  }
  func.func @transform_0(%arg0: i32) -> (i32, i32) {
    %c0_i32 = arith.constant 0 : i32
    %c0_i32_0 = arith.constant 0 : i32
    return %arg0, %c0_i32 : i32, i32
  }
  func.func @transform_1(%arg0: i32) -> (i32, i32) {
    %c0_i32 = arith.constant 0 : i32
    %c0_i32_0 = arith.constant 0 : i32
    return %arg0, %c0_i32 : i32, i32
  }
  func.func @transform_2(%arg0: i32) -> (i32, i32) {
    %c0_i32 = arith.constant 0 : i32
    %c0_i32_0 = arith.constant 0 : i32
    return %c0_i32, %arg0 : i32, i32
  }
}

</mosaic_0001>

<bundles_post_ra>
// kernel: tpu_custom_call.1
= control target key start
LH: loop header
LB: loop body
LE: loop exit
PB: predicated region body
PF: predicated region fallthrough
CT: control target
= control target key end

     0   :  { %7 = vsyncpa [#allocation3], 0  ;;  %s521_s0 = inlined_call_operand.vmem [shape: f32[16,128], index: 0, kind: input, shape index: {}]   ;;  %s522_s1 = inlined_call_operand.vmem [shape: s32[16,1], index: 1, kind: input, shape index: {}]   ;;  %s523_s2 = inlined_call_operand.hbm [shape: f32[1,256], index: 2, kind: output, shape index: {}]  }
   0x1   :  { %9 = vsyncpa [#allocation3 + $0x1], 0  ;;  %s424_s9 = smov 0   ;;  %s426_s10 = smov 0  }
   0x2   :  { %s428_s11 = smov 0   ;;  %s430_s12 = smov 0  }
   0x3 LB: > { %s445_s13 = sadd.s32 4294967295, %s405_s12   ;;  %s286_s14 = sadd.s32 4294967294, %s405_s12   ;;  %s405_s12 = sphi %s430_s12, %s529_s12   ;;  %s401_s11 = sphi %s428_s11, %s528_s11   ;;  %s397_s10 = sphi %s426_s10, %s527_s10   ;;  %s393_s9 = sphi %s424_s9, %s526_s9  }
   0x4   : > { %s449_s15 = sadd.s32 1, %s405_s12   ;;  %s74_s16 = sadd.s32 1, %s401_s11 }
   0x5   : > { %s71_s17 = ssub.s32 %s405_s12, %s449_s15  ;;  %p84_p0 = scmp.ne.s32.totalorder %s401_s11, %s397_s10 }
   0x6   : > { %p72_p1 = scmp.eq.s32.totalorder %s71_s17, 0  ;;  %p85_p2 = scmp.eq.s32.totalorder %s445_s13, 1 }
   0x7   : > { %p90_p3 = scmp.ne.s32.totalorder %s397_s10, %s393_s9  ;;  %p91_p4 = scmp.eq.s32.totalorder %s286_s14, 1 }
   0x8   : > { %s460_s18 = scalar_select %p72_p1, %s401_s11, %s74_s16  }
   0x9   : > { %p462_p5 = por %p85_p2, %p84_p0  ;;  %p466_p6 = por %p91_p4, %p90_p3 }
   0xa   : > { %p289_p7 = scmp.ge.s32.totalorder %s405_s12, 1  ;;  %p123_p8 = scmp.lt.s32.totalorder %s405_s12, 3 }
   0xc   : > { %p124_p9 = pnand %p289_p7, %p123_p8 }
   0xd   : > { %p147_p10 = scmp.lt.s32.totalorder (!%p124_p9), %s445_s13, 1  ;;  %s292_s29 = sshll.u32 (!%p124_p9), %s445_s13, 3 }
   0xe   : > { %127 = sbr.rel (%p124_p9) target bundleno = 581 (0x245), region = 28  ;;  %s145_s30 = sand.u32 (!%p124_p9), 1, %s397_s10  }
   0xf   : > { %s293_s3 = sshll.u32 (!%p124_p9), %s445_s13, 4  ;;  %s146_s4 = scalar_lea.vmem (!%p124_p9), [#allocation2], %s145_s30 }
  0x10   : > { %s219_s5 = sshll.u32 (!%p124_p9), %s146_s4, 4  ;;  %s486_s14 = scalar_lea.hbm (!%p124_p9), %s523_s2, %s293_s3  ;;  %s220_s5 = int_to_ptr.vmem [resolvable:$true] %s219_s5 }
  0x11   : > { %s207_s16 = scalar_lea.sflag (!%p124_p9), [#allocation3], %s145_s30  ;;  %s345_s17 = scalar_lea.vmem (!%p124_p9), %s220_s5, 16 }
  0x12   : > { %p346_p11 = scmp.ne.s32.totalorder (!%p124_p9), %s220_s5, %s345_s17 }
  0x13   : > { %v407_v0 = vmov 0   ;;  %s148_s21 = scalar_select %p147_p10, %s445_s13, 1  ;;  %v167_v6 = vlaneseq  ;;  %v187_v20 = vstv %s292_s29  ;;  %vm191_vm2 = vcmask 7168  }
  0x14   : > { %338 = vset.pattern.permute.xlu0 %v407_v0  ;;  %p347_p12 = pnand %p346_p11, %p462_p5  ;;  %s408_s13 = smov [#allocation2]  }
  0x15   : > { %s290_s22 = sshll.u32 %s148_s21, 3  ;;  %v168_v7 = vand.u32 127, %v167_v6  ;;  %v186_v19 = vshrl.u32 %v167_v6, 7  ;;  %s349_s21 = sshll.u32 %s408_s13, 4  ;;  %s350_s21 = int_to_ptr.vmem [resolvable:$false] %s349_s21 }
  0x16   : > { %s150_s25 = scalar_lea.vmem %s521_s0, %s290_s22  ;;  %s154_s28 = scalar_lea.vmem %s522_s1, %s290_s22 }
  0x17   : > { %v155_v1 = vld [vmem:[%s150_s25] sm:$0xff]  ;;  %v188_v23 = vadd.s32 %v187_v20, %v186_v19  ;;  %vm202_vm3 = vcmp.eq.s32.totalorder %v168_v7, 0  ;;  %p348_p13 = pneg %p347_p12  ;;  %s351_s22 = scalar_lea.vmem %s350_s21, 32 }
  0x18   : > { %157 = vmax.xlane.f32.xlu0 %v155_v1  ;;  %v156_v2 = vld [vmem:[%s154_s28] sm:$0xff]  ;;  %p352_p0 = scmp.lt.s32.totalorder %s220_s5, %s350_s21  ;;  %p353_p1 = scmp.lt.s32.totalorder %s351_s22, %s345_s17 }
  0x19   : > { %vm189_vm1 = vcmp.lt.s32.totalorder %v188_v23, 16 }
  0x1a   : > { %p354_p2 = por %p353_p1, %p352_p0 }
  0x1c   : > { %p355_p3 = pnand %p354_p2, %p348_p13 }
  0x2e   : > { %170 = vperm.xlu0 %338, %v156_v2  }
  0xa1   : > { %v158_v3 = vpop.xlane.xlu0 %157 }
  0xa2   : > { %v159_v4 = vsub.f32 %v155_v1, %v158_v3 }
  0xa4   : > { %v160_v5 = vmul.f32 1.442695, %v159_v4 }
  0xa6   : > { %339 = vpow2.f32 %v160_v5 }
  0xa9   : > { %v171_v8 = vpop.permute.xlu0 %170 }
  0xaa   : > { %vm172_vm0 = vcmp.eq.s32.totalorder %v168_v7, %v171_v8 }
  0xab   : > { %v173_v10 = vsel %vm172_vm0, %v155_v1, 0.0 }
  0xb3   : > { %v340_v9 = vpop.eup %339 }
  0xb4   : > { %162 = vadd.xlane.f32.xlu1 %v340_v9 }
  0xb8   : > { %174 = vadd.xlane.f32.xlu1 %v173_v10 }
 0x13d   : > { %v163_v11 = vpop.xlane.xlu1 %162 }
 0x13e   : > { %341 = vlog2.f32 %v163_v11 }
 0x141   : > { %v175_v14 = vpop.xlane.xlu1 %174 }
 0x14b   : > { %v342_v12 = vpop.eup %341 }
 0x14c   : > { %v165_v13 = vmul.f32 0.6931472, %v342_v12 }
 0x14e   : > { %v166_v15 = vadd.f32 %v165_v13, %v158_v3 }
 0x150   : > { %v176_v16 = vsub.f32 %v166_v15, %v175_v14 }
 0x152   : > { %v177_v17 = vsub.f32 0.0, %v176_v16 }
 0x154   : > { %v178_v18 = vmul.f32 1.442695, %v177_v17 }
 0x156   : > { %343 = vpow2.f32 %v178_v18 }
 0x163   : > { %v344_v21 = vpop.eup %343 }
 0x164   : > { %v180_v22 = vsub.f32 1.0, %v344_v21 }
 0x166   : > { %v181_v24 = vmul.f32 %v180_v22, %v180_v22 }
 0x168   : > { %v182_v25 = vmul.f32 %v181_v24, %v180_v22 }
 0x16a   : > { %v183_v26 = vmul.f32 %v182_v25, %v176_v16 }
 0x16c   : > { %v190_v27 = vsel %vm189_vm1, %v183_v26, 0.0 }
 0x16d   : > { %v192_v28 = vsel %vm191_vm2, %v190_v27, 0.0 }
 0x16e   : > { %193 = vadd.xlane.f32.xlu1 %v192_v28 }
 0x1f7   : > { %v194_v29 = vpop.xlane.xlu1 %193 }
 0x1f8   : > { %v195_v30 = vrot.slane %v194_v29, 4 }
 0x1fa   : > { %v196_v31 = vadd.f32 %v195_v30, %v194_v29 }
 0x1fc   : > { %v197_v32 = vrot.slane %v196_v31, 2 }
 0x1fe   : > { %v198_v33 = vadd.f32 %v197_v32, %v196_v31 }
 0x200   : > { %v199_v34 = vrot.slane %v198_v33, 1 }
 0x202   : > { %v200_v35 = vadd.f32 %v199_v34, %v198_v33 }
 0x204   : > { %296 = vpush %v200_v35 }
 0x235   : > { %s297_s6 = spop %296 }
 0x236   : > { %v203_v36 = vstv %s297_s6 }
 0x237   : > { %v204_v37 = vsel %vm202_vm3, %v203_v36, 0.0 }
 0x238   : > { %205 = vst [vmem:[%s146_s4] sm:$0x1] %v204_v37 }
 0x239   : > { %358 = shalt.err (!%p355_p3)
}
 0x23a   : > { %s359_s23 = scalar_lea.hbm %s486_s14, 16  ;;  %s363_s26 = scalar_lea.hbm %s523_s2, 32 }
 0x23b   : > { %p360_p4 = scmp.ne.s32.totalorder %s486_s14, %s359_s23  ;;  %p364_p9 = scmp.lt.s32.totalorder %s486_s14, %s523_s2 }
 0x23c   : > { %p365_p10 = scmp.lt.s32.totalorder %s363_s26, %s359_s23 }
 0x23d   : > { %p361_p7 = pnand %p360_p4, %p462_p5 }
 0x23e   : > { %p366_p11 = por %p365_p10, %p364_p9 }
 0x23f   : > { %p362_p8 = pneg %p361_p7 }
 0x241   : > { %p367_p12 = pnand %p366_p11, %p362_p8 }
 0x243   : > { %370 = shalt.err (!%p367_p12)
}
 0x244   : > { %298 = dma.vmem_to_hbm [thread:$0]  (%p462_p5), %s220_s5, 16, %s486_s14, %s207_s16  }
 0x245 PF: > { %p304_p13 = scmp.ge.s32.totalorder %s405_s12, 2  ;;  %s231_s29 = sand.u32 1, %s393_s9  }
 0x246   : > { %s232_s30 = scalar_lea.sflag [#allocation3], %s231_s29 }
 0x247   : > { %p301_p0 = pnand %p304_p13, %p466_p6 }
 0x249   : > { %p302_p1 = pneg %p301_p0 }
 0x24b   : > { %388 = dma.done.wait (%p302_p1), %s232_s30, 16  }
 0x24c   : > { %390 = vsyncadd (%p302_p1), %s232_s30, 4294967280  ;;  %p12_p2 = scmp.ge.s32.totalorder %s449_s15, 4   ;;  %s526_s9 = smov %s397_s10 }
 0x24d   : > { %s527_s10 = smov %s401_s11  ;;  %s528_s11 = smov %s460_s18 }
 0x24e   : > { %s529_s12 = smov %s449_s15  ;;  %14 = sbr.rel (!%p12_p2) target bundleno = 3 (0x3), region = 66 }
 0x253   :  { %236 = vsyncpa [#allocation3], 1 }
 0x254   :  { %238 = vsyncpa [#allocation3 + $0x1], 1 }

</bundles_post_ra>
